<compile_context>
chip_gen: v6e
topology: v6e:2x2x1
jax: 0.10.0
libtpu: 0.0.40
codegen_flags: <defaults>
</compile_context>

<pallas_src>
import functools

import jax
import jax.numpy as jnp
from jax.experimental import pallas as pl
from jax.experimental.pallas import tpu as pltpu


def _round_up(x, m):
    return ((x + m - 1) // m) * m


def _cdiv(a, b):
    return (a + b - 1) // b


# ---------------------------------------------------------------------------
# Parameter slab layout (f32, all rows 128 lanes wide, 8-row-aligned regions):
#   rows [0,          s_pad)        : W1 (n_states, 32), zero-padded
#   row   s_pad                     : b1 in cols [0,32)
#   rows [s_pad+8,    s_pad+136)    : W2 (32, 20), zero-padded to (128,128)
#   row   s_pad+136                 : b2 in cols [0,20)
#   rows [s_pad+144,  s_pad+272)    : W3 (20, n_actions), zero-padded
#   row   s_pad+272                 : b3 in cols [0,n_actions); cols >=
#                                     n_actions hold -1e30 (baked softmax mask)
# Zero padding is semantically exact: ReLU(0 + 0) = 0 in padded lanes, and
# zero rows of the next weight block contribute nothing to the contraction.
# ---------------------------------------------------------------------------
def pack_params(params):
    """Pack all six parameter tensors into one (R, 128) f32 slab.

    Hoist this: call it once per parameter update, not per forward.
    """
    w1 = jnp.asarray(params["w1"], jnp.float32)
    w2 = jnp.asarray(params["w2"], jnp.float32)
    w3 = jnp.asarray(params["w3"], jnp.float32)
    b1 = jnp.asarray(params["b1"], jnp.float32).reshape(-1)
    b2 = jnp.asarray(params["b2"], jnp.float32).reshape(-1)
    b3 = jnp.asarray(params["b3"], jnp.float32).reshape(-1)

    n_states = w1.shape[0]
    n_actions = w3.shape[1]
    s_pad = _round_up(n_states, 8)
    R = s_pad + 280

    slab = jnp.zeros((R, 128), jnp.float32)
    slab = slab.at[0:n_states, 0:32].set(w1)
    slab = slab.at[s_pad, 0:32].set(b1)
    slab = slab.at[s_pad + 8:s_pad + 40, 0:20].set(w2)
    slab = slab.at[s_pad + 136, 0:20].set(b2)
    slab = slab.at[s_pad + 144:s_pad + 164, 0:n_actions].set(w3)
    # b3 row doubles as the softmax lane mask for padded action lanes.
    b3_row = jnp.full((128,), -1e30, jnp.float32).at[0:n_actions].set(b3)
    slab = slab.at[s_pad + 272].set(b3_row)
    return slab


def _policy_kernel(x_ref, p_ref, o_ref, *, s_pad, n_actions):
    # Static row offsets into the packed parameter slab (single resident DMA).
    r_w1 = 0
    r_b1 = s_pad
    r_w2 = s_pad + 8
    r_b2 = s_pad + 136
    r_w3 = s_pad + 144
    r_b3 = s_pad + 272

    x = x_ref[...].astype(jnp.bfloat16)                   # (TM, s_pad)

    # Linear 1 + ReLU -> (TM, 128) f32, lanes >= 32 are exactly zero.
    w1 = p_ref[r_w1:r_w1 + s_pad, :].astype(jnp.bfloat16)
    b1 = p_ref[r_b1:r_b1 + 1, :]                          # f32 (1, 128)
    h1 = jnp.maximum(
        jnp.dot(x, w1, preferred_element_type=jnp.float32) + b1, 0.0)

    # Linear 2 + ReLU -> (TM, 128) f32, lanes >= 20 are exactly zero.
    w2 = p_ref[r_w2:r_w2 + 128, :].astype(jnp.bfloat16)
    b2 = p_ref[r_b2:r_b2 + 1, :]
    h2 = jnp.maximum(
        jnp.dot(h1.astype(jnp.bfloat16), w2,
                preferred_element_type=jnp.float32) + b2, 0.0)

    # Linear 3 -> logits; padded lanes come out at -1e30 (mask baked into b3).
    w3 = p_ref[r_w3:r_w3 + 128, :].astype(jnp.bfloat16)
    b3 = p_ref[r_b3:r_b3 + 1, :]
    z = jnp.dot(h2.astype(jnp.bfloat16), w3,
                preferred_element_type=jnp.float32) + b3

    # Numerically stable softmax over the 128-lane tile (padded lanes -> 0).
    z_max = jnp.max(z, axis=-1, keepdims=True)
    e = jnp.exp(z - z_max)
    denom = jnp.sum(e, axis=-1, keepdims=True)
    inv = pl.reciprocal(denom, approx=True)               # EUP slot
    inv = inv * (2.0 - denom * inv)                       # one NR step -> ~f32
    probs = e * inv

    # Narrow store: only the real action lanes reach the (TM, n_actions) block.
    o_ref[...] = probs[:, :n_actions].astype(o_ref.dtype)


@functools.partial(jax.jit, static_argnames=("n_actions",))
def reinforce_policy_forward(x, slab, *, n_actions):
    """Fused MLP + softmax forward.

    x: (B, n_states) array; slab: packed params from pack_params().
    returns: (B, n_actions) float32 action probabilities.
    """
    B, n_states = x.shape
    s_pad = _round_up(n_states, 8)
    R = slab.shape[0]

    x32 = x.astype(jnp.float32)
    if s_pad != n_states:
        # Feature-dim pad only (exact under the zero-padded W1 rows); fused
        # under this jit.  No batch-dim padding, no materialized x_pad slab.
        x32 = jnp.pad(x32, ((0, 0), (0, s_pad - n_states)))

    # Batch tile: <= 1024 rows, but guarantee >= 2 grid steps whenever B >= 16
    # so a v7x megacore can shard the "parallel" axis across both TensorCores.
    # Ragged last block is fine: its out-of-range rows are discarded on store.
    TARGET_TM = 1024
    if B >= 16:
        TM = min(TARGET_TM, _round_up(_cdiv(B, 2), 8))
    else:
        TM = _round_up(max(B, 1), 8)
    grid = _cdiv(B, TM)

    kernel = functools.partial(_policy_kernel, s_pad=s_pad, n_actions=n_actions)

    cost = pl.CostEstimate(
        flops=2 * B * (s_pad * 128 + 128 * 128 + 128 * 128),
        transcendentals=B * 128,
        bytes_accessed=int(B * s_pad * 4 + R * 128 * 4 + B * n_actions * 4),
    )

    return pl.pallas_call(
        kernel,
        out_shape=jax.ShapeDtypeStruct((B, n_actions), jnp.float32),
        grid_spec=pltpu.PrefetchScalarGridSpec(
            num_scalar_prefetch=0,
            grid=(grid,),
            in_specs=[
                pl.BlockSpec((TM, s_pad), lambda i: (i, 0)),   # batch-tiled x
                # Resident parameter slab: constant index_map, fetched once.
                pl.BlockSpec((R, 128), lambda i: (0, 0)),
            ],
            # Narrow, full-array-width output block: contiguous DMA per tile.
            out_specs=pl.BlockSpec((TM, n_actions), lambda i: (i, 0)),
        ),
        compiler_params=pltpu.CompilerParams(
            dimension_semantics=("parallel",),
        ),
        cost_estimate=cost,
    )(x32, slab)


def init_params(key, n_states, n_actions):
    """Deterministic init mimicking PyTorch Linear default (uniform +-1/sqrt(fan_in))."""
    def linear(k, fan_in, fan_out):
        kw, kb = jax.random.split(k)
        bound = 1.0 / jnp.sqrt(jnp.float32(fan_in))
        w = jax.random.uniform(kw, (fan_in, fan_out), jnp.float32, -bound, bound)
        b = jax.random.uniform(kb, (1, fan_out), jnp.float32, -bound, bound)
        return w, b

    k1, k2, k3 = jax.random.split(key, 3)
    w1, b1 = linear(k1, n_states, 32)
    w2, b2 = linear(k2, 32, 20)
    w3, b3 = linear(k3, 20, n_actions)
    return {"w1": w1, "b1": b1, "w2": w2, "b2": b2, "w3": w3, "b3": b3}


def _reference(x, p):
    h1 = jnp.maximum(x @ p["w1"] + p["b1"], 0.0)
    h2 = jnp.maximum(h1 @ p["w2"] + p["b2"], 0.0)
    z = h2 @ p["w3"] + p["b3"]
    return jax.nn.softmax(z, axis=-1)


if __name__ == "__main__":
    # Shapes consistent with a gym env like CartPole: 4 obs dims, 2 actions.
    N_STATES, N_ACTIONS = 4, 2

    key = jax.random.PRNGKey(0)
    kx, kx2, kp = jax.random.split(key, 3)
    params = init_params(kp, N_STATES, N_ACTIONS)
    slab = pack_params(params)   # hoisted: once per parameter update

    # --- tiny RL-style batch (single grid step) -----------------------------
    B = 8
    x = jax.random.normal(kx, (B, N_STATES), dtype=jnp.float32)
    probs = reinforce_policy_forward(x, slab, n_actions=N_ACTIONS)
    jax.block_until_ready(probs)

    expected = _reference(x, params)
    assert probs.shape == (B, N_ACTIONS)
    # bf16 MXU operands -> compare against f32 reference with loosened tol.
    assert jnp.allclose(probs, expected, atol=2e-2, rtol=2e-2)
    assert jnp.allclose(jnp.sum(probs, axis=-1), 1.0, atol=1e-3)

    # --- larger batch: exercises the >=2-step grid and ragged last block ----
    B2 = 200
    x2 = jax.random.normal(kx2, (B2, N_STATES), dtype=jnp.float32)
    probs2 = reinforce_policy_forward(x2, slab, n_actions=N_ACTIONS)
    jax.block_until_ready(probs2)

    expected2 = _reference(x2, params)
    assert probs2.shape == (B2, N_ACTIONS)
    assert jnp.allclose(probs2, expected2, atol=2e-2, rtol=2e-2)
    assert jnp.allclose(jnp.sum(probs2, axis=-1), 1.0, atol=1e-3)

    # TODO(synk): select_action (Categorical sampling) and train_batch
    # (log-prob gather, REINFORCE loss, optimizer step) are host/training-side
    # logic outside the forward pass and are not implemented as kernels.

    print("KERNEL_OK")
</pallas_src>

<mosaic_0001>
module attributes {stable_mosaic.version = 11 : i64} {
  func.func @_policy_kernel(%arg0: i32, %arg1: memref<8x8xf32, #tpu.memory_space<vmem>>, %arg2: memref<288x128xf32, #tpu.memory_space<vmem>>, %arg3: memref<8x2xf32, #tpu.memory_space<vmem>>) attributes {dimension_semantics = [#tpu.dimension_semantics<parallel>], iteration_bounds = array<i64: 1>, scalar_prefetch = 0 : i64, scratch_operands = 0 : i64, tpu.core_type = #tpu.core_type<tc>, window_params = [{transform_indices = @transform_0, window_bounds = array<i64: 8, 8>}, {pipeline_mode = #tpu.pipeline_mode<synchronous>, transform_indices = @transform_1, window_bounds = array<i64: 288, 128>}, {transform_indices = @transform_2, window_bounds = array<i64: 8, 2>}]} {
    %c0 = arith.constant 0 : index
    %c0_0 = arith.constant 0 : index
    %0 = vector.load %arg1[%c0, %c0_0] : memref<8x8xf32, #tpu.memory_space<vmem>>, vector<8x8xf32>
    %1 = arith.truncf %0 : vector<8x8xf32> to vector<8x8xbf16>
    %c0_1 = arith.constant 0 : index
    %c0_2 = arith.constant 0 : index
    %2 = vector.load %arg2[%c0_1, %c0_2] : memref<288x128xf32, #tpu.memory_space<vmem>>, vector<8x128xf32>
    %3 = arith.truncf %2 : vector<8x128xf32> to vector<8x128xbf16>
    %c8 = arith.constant 8 : index
    %c0_3 = arith.constant 0 : index
    %4 = vector.load %arg2[%c8, %c0_3] : memref<288x128xf32, #tpu.memory_space<vmem>>, vector<1x128xf32>
    %cst = arith.constant dense<0.000000e+00> : vector<8x128xf32>
    %5 = tpu.matmul %1, %3, %cst {dimension_numbers = #tpu.dot_dimension_numbers<[1], [0], [0], [1], [0, 0, 1, 1], [], []>} : vector<8x8xbf16>, vector<8x128xbf16>, vector<8x128xf32> -> vector<8x128xf32>
    %6 = vector.broadcast %4 : vector<1x128xf32> to vector<8x128xf32>
    %7 = arith.addf %5, %6 : vector<8x128xf32>
    %cst_4 = arith.constant 0.000000e+00 : f32
    %8 = vector.broadcast %cst_4 : f32 to vector<8x128xf32>
    %9 = arith.maximumf %7, %8 : vector<8x128xf32>
    %c16 = arith.constant 16 : index
    %c0_5 = arith.constant 0 : index
    %10 = vector.load %arg2[%c16, %c0_5] : memref<288x128xf32, #tpu.memory_space<vmem>>, vector<128x128xf32>
    %11 = arith.truncf %10 : vector<128x128xf32> to vector<128x128xbf16>
    %c144 = arith.constant 144 : index
    %c0_6 = arith.constant 0 : index
    %12 = vector.load %arg2[%c144, %c0_6] : memref<288x128xf32, #tpu.memory_space<vmem>>, vector<1x128xf32>
    %13 = arith.truncf %9 : vector<8x128xf32> to vector<8x128xbf16>
    %cst_7 = arith.constant dense<0.000000e+00> : vector<8x128xf32>
    %14 = tpu.matmul %13, %11, %cst_7 {dimension_numbers = #tpu.dot_dimension_numbers<[1], [0], [0], [1], [0, 0, 1, 1], [], []>} : vector<8x128xbf16>, vector<128x128xbf16>, vector<8x128xf32> -> vector<8x128xf32>
    %15 = vector.broadcast %12 : vector<1x128xf32> to vector<8x128xf32>
    %16 = arith.addf %14, %15 : vector<8x128xf32>
    %cst_8 = arith.constant 0.000000e+00 : f32
    %17 = vector.broadcast %cst_8 : f32 to vector<8x128xf32>
    %18 = arith.maximumf %16, %17 : vector<8x128xf32>
    %c152 = arith.constant 152 : index
    %c0_9 = arith.constant 0 : index
    %19 = vector.load %arg2[%c152, %c0_9] : memref<288x128xf32, #tpu.memory_space<vmem>>, vector<128x128xf32>
    %20 = arith.truncf %19 : vector<128x128xf32> to vector<128x128xbf16>
    %c280 = arith.constant 280 : index
    %c0_10 = arith.constant 0 : index
    %21 = vector.load %arg2[%c280, %c0_10] : memref<288x128xf32, #tpu.memory_space<vmem>>, vector<1x128xf32>
    %22 = arith.truncf %18 : vector<8x128xf32> to vector<8x128xbf16>
    %cst_11 = arith.constant dense<0.000000e+00> : vector<8x128xf32>
    %23 = tpu.matmul %22, %20, %cst_11 {dimension_numbers = #tpu.dot_dimension_numbers<[1], [0], [0], [1], [0, 0, 1, 1], [], []>} : vector<8x128xbf16>, vector<128x128xbf16>, vector<8x128xf32> -> vector<8x128xf32>
    %24 = vector.broadcast %21 : vector<1x128xf32> to vector<8x128xf32>
    %25 = arith.addf %23, %24 : vector<8x128xf32>
    %cst_12 = arith.constant dense<0xFF800000> : vector<8xf32>
    %26 = vector.multi_reduction <maximumf>, %25, %cst_12 [1] : vector<8x128xf32> to vector<8xf32>
    %27 = vector.shape_cast %26 : vector<8xf32> to vector<8x1xf32>
    %28 = vector.broadcast %27 : vector<8x1xf32> to vector<8x128xf32>
    %29 = arith.subf %25, %28 : vector<8x128xf32>
    %30 = math.exp %29 : vector<8x128xf32>
    %cst_13 = arith.constant dense<0.000000e+00> : vector<8xf32>
    %31 = vector.multi_reduction <add>, %30, %cst_13 [1] : vector<8x128xf32> to vector<8xf32>
    %32 = vector.shape_cast %31 : vector<8xf32> to vector<8x1xf32>
    %33 = tpu.reciprocal %32 {approx = true} : vector<8x1xf32> -> vector<8x1xf32>
    %34 = arith.mulf %32, %33 : vector<8x1xf32>
    %cst_14 = arith.constant 2.000000e+00 : f32
    %35 = vector.broadcast %cst_14 : f32 to vector<8x1xf32>
    %36 = arith.subf %35, %34 : vector<8x1xf32>
    %37 = arith.mulf %33, %36 : vector<8x1xf32>
    %38 = vector.broadcast %37 : vector<8x1xf32> to vector<8x128xf32>
    %39 = arith.mulf %30, %38 : vector<8x128xf32>
    %40 = vector.extract_strided_slice %39 {offsets = [0, 0], sizes = [8, 2], strides = [1, 1]} : vector<8x128xf32> to vector<8x2xf32>
    %c0_15 = arith.constant 0 : index
    %c0_16 = arith.constant 0 : index
    %41 = vector.load %arg3[%c0_15, %c0_16] : memref<8x2xf32, #tpu.memory_space<vmem>>, vector<8x2xf32>
    tpu.vector_store %arg3[%c0_15, %c0_16], %40 {strides = array<i32>} : memref<8x2xf32, #tpu.memory_space<vmem>>, vector<8x2xf32>,
    return
  }
  func.func @transform_0(%arg0: i32) -> (i32, i32) {
    %c0_i32 = arith.constant 0 : i32
    %c0_i32_0 = arith.constant 0 : i32
    return %arg0, %c0_i32 : i32, i32
  }
  func.func @transform_1(%arg0: i32) -> (i32, i32) {
    %c0_i32 = arith.constant 0 : i32
    %c0_i32_0 = arith.constant 0 : i32
    %c0_i32_1 = arith.constant 0 : i32
    return %c0_i32, %c0_i32_0 : i32, i32
  }
  func.func @transform_2(%arg0: i32) -> (i32, i32) {
    %c0_i32 = arith.constant 0 : i32
    %c0_i32_0 = arith.constant 0 : i32
    return %arg0, %c0_i32 : i32, i32
  }
}

</mosaic_0001>

<bundles_post_ra>
// kernel: reinforce_policy_forward.1
= control target key start
LH: loop header
LB: loop body
LE: loop exit
PB: predicated region body
PF: predicated region fallthrough
CT: control target
= control target key end

     0   :  { %7 = vsyncpa [#allocation3], 0  ;;  %s345_s9 = smov [#allocation2]   ;;  %s397_s0 = inlined_call_operand.vmem [shape: f32[8,8], index: 0, kind: input, shape index: {}]   ;;  %s398_s1 = inlined_call_operand.hbm [shape: f32[288,128], index: 1, kind: input, shape index: {}]   ;;  %s399_s2 = inlined_call_operand.vmem [shape: f32[8,2], index: 2, kind: output, shape index: {}]  }
   0x1   :  { %s15_s10 = sshll.u32 %s345_s9, 4  ;;  %s16_s10 = int_to_ptr.vmem [resolvable:$true] %s15_s10 }
   0x2   :  { %s331_s11 = scalar_lea.vmem %s16_s10, 4608  ;;  %p336_p1 = scmp.lt.s32.totalorder %s16_s10, %s16_s10 }
   0x3   :  { %p332_p0 = scmp.ne.s32.totalorder %s16_s10, %s331_s11  ;;  %p337_p2 = scmp.lt.s32.totalorder %s331_s11, %s331_s11 }
   0x5   :  { %p338_p3 = por %p337_p2, %p336_p1 }
   0x7   :  { %p339_p4 = pnand %p338_p3, %p332_p0 }
   0x9   :  { %342 = shalt.err (!%p339_p4)
}
   0xa   :  { %s346_s12 = smov 128   ;;  %s347_s13 = smov 8  }
   0xb   :  { %21 = dma.hbm_to_vmem [thread:$0]  %s398_s1, 4608, %s16_s10, [#allocation3], %s346_s12, %s346_s12, %s347_s13  }
   0xc   :  { %343 = dma.done.wait [#allocation3], 4608  }
   0xd   :  { %344 = vsyncadd [#allocation3], 4294962688  ;;  %v348_v0 = vmov 0.0   ;;  %vm349_vm0 = vmmov 0   ;;  %v28_v1 = vld [vmem:[#allocation2] sm:$0xff]  ;;  %vm39_vm1 = vcmask 1043456  }
   0xe   :  { %268 = vmatprep.subr.bf16.mxu0 %v348_v0  ;;  %270 = vmatprep.mubr.msk.bf16.mxu0 %vm349_vm0, %v348_v0  ;;  %v26_v2 = vld [vmem:[%s397_s0] sm:$0xff]  ;;  %v29_v4 = vpack.c.bf16 %v28_v1, %v28_v1  ;;  %v99_v5 = vld [vmem:[#allocation2 + $0x88] sm:$0xff]  ;;  %v96_v6 = vld [vmem:[#allocation2 + $0x70] sm:$0xff]  ;;  %vm35_vm2 = vcmask 64512   ;;  %vm237_vm3 = vcmask 15360  }
   0xf   :  { %274 = vmatprep.subr.bf16.mxu1 %v348_v0  ;;  %290 = vmatprep.mubr.msk.bf16.mxu1 %vm349_vm0, %v348_v0  ;;  %v98_v3 = vld [vmem:[#allocation2 + $0x80] sm:$0xff]  ;;  %v97_v7 = vld [vmem:[#allocation2 + $0x78] sm:$0xff]  ;;  %v27_v10 = vpack.c.bf16 %v26_v2, %v26_v2  ;;  %v95_v13 = vld [vmem:[#allocation2 + $0x68] sm:$0xff] }
  0x10   :  { %v107_v8 = vpack.c.bf16 %v99_v5, %v98_v3  ;;  %v41_v9 = vsel %vm39_vm1, %v29_v4, 0  ;;  %v106_v11 = vpack.c.bf16 %v97_v7, %v96_v6  ;;  %v94_v12 = vld [vmem:[#allocation2 + $0x60] sm:$0xff]  ;;  %v92_v15 = vld [vmem:[#allocation2 + $0x50] sm:$0xff]  ;;  %v93_v16 = vld [vmem:[#allocation2 + $0x58] sm:$0xff] }
  0x11   :  { %269 = vmatpush3.bf16.msra.mxu0 %v41_v9  ;;  %v105_v14 = vpack.c.bf16 %v95_v13, %v94_v12  ;;  %v104_v17 = vpack.c.bf16 %v93_v16, %v92_v15  ;;  %v90_v18 = vld [vmem:[#allocation2 + $0x40] sm:$0xff]  ;;  %v91_v19 = vld [vmem:[#allocation2 + $0x48] sm:$0xff]  ;;  %v88_v21 = vld [vmem:[#allocation2 + $0x30] sm:$0xff] }
  0x12   :  { %275 = vmatpush3.bf16.msra.mxu1 %v107_v8  ;;  %294 = vmatprep.subr.bf16.mxu0 %v348_v0  ;;  %v103_v20 = vpack.c.bf16 %v91_v19, %v90_v18  ;;  %v89_v22 = vld [vmem:[#allocation2 + $0x38] sm:$0xff]  ;;  %v86_v24 = vld [vmem:[#allocation2 + $0x20] sm:$0xff]  ;;  %v87_v25 = vld [vmem:[#allocation2 + $0x28] sm:$0xff] }
  0x13   :  { %276 = vmatprep.subr.bf16.mxu1 %v348_v0  ;;  %v102_v23 = vpack.c.bf16 %v89_v22, %v88_v21  ;;  %v101_v26 = vpack.c.bf16 %v87_v25, %v86_v24  ;;  %v84_v27 = vld [vmem:[#allocation2 + $0x10] sm:$0xff]  ;;  %v85_v28 = vld [vmem:[#allocation2 + $0x18] sm:$0xff]  ;;  %v169_v30 = vld [vmem:[#allocation2 + $0x108] sm:$0xff] }
  0x14   :  { %271 = vmatmul.mubr.msk.bf16.vlgmr.msra.gmra.mxu0 %vm35_vm2, %v27_v10  ;;  %v100_v29 = vpack.c.bf16 %v85_v28, %v84_v27  ;;  %v170_v31 = vld [vmem:[#allocation2 + $0x110] sm:$0xff]  ;;  %v167_v32 = vld [vmem:[#allocation2 + $0xf8] sm:$0xff]  ;;  %v168_v34 = vld [vmem:[#allocation2 + $0x100] sm:$0xff] }
  0x15   :  { %310 = vmatprep.mubr.msk.bf16.mxu0 %vm349_vm0, %v348_v0  ;;  %v178_v33 = vpack.c.bf16 %v170_v31, %v169_v30  ;;  %v177_v35 = vpack.c.bf16 %v168_v34, %v167_v32  ;;  %v165_v36 = vld [vmem:[#allocation2 + $0xe8] sm:$0xff]  ;;  %v166_v37 = vld [vmem:[#allocation2 + $0xf0] sm:$0xff]  ;;  %v163_v39 = vld [vmem:[#allocation2 + $0xd8] sm:$0xff] }
  0x16   :  { %277 = vmatpush3.bf16.msra.mxu1 %v106_v11  ;;  %v176_v38 = vpack.c.bf16 %v166_v37, %v165_v36  ;;  %v164_v40 = vld [vmem:[#allocation2 + $0xe0] sm:$0xff]  ;;  %v161_v42 = vld [vmem:[#allocation2 + $0xc8] sm:$0xff]  ;;  %v162_v43 = vld [vmem:[#allocation2 + $0xd0] sm:$0xff] }
  0x17   :  { %278 = vmatprep.subr.bf16.mxu1 %v348_v0  ;;  %295 = vmatpush3.bf16.msra.mxu0 %v178_v33  ;;  %v175_v41 = vpack.c.bf16 %v164_v40, %v163_v39  ;;  %v174_v44 = vpack.c.bf16 %v162_v43, %v161_v42  ;;  %v159_v45 = vld [vmem:[#allocation2 + $0xb8] sm:$0xff]  ;;  %v160_v46 = vld [vmem:[#allocation2 + $0xc0] sm:$0xff]  ;;  %v244_v48 = vld [vmem:[#allocation2 + $0x8] ss:$0 sm:$0xff] }
  0x18   :  { %296 = vmatprep.subr.bf16.mxu0 %v348_v0  ;;  %v173_v47 = vpack.c.bf16 %v160_v46, %v159_v45  ;;  %v157_v56 = vld [vmem:[#allocation2 + $0xa8] sm:$0xff]  ;;  %v158_v57 = vld [vmem:[#allocation2 + $0xb0] sm:$0xff]  ;;  %v155_v59 = vld [vmem:[#allocation2 + $0x98] sm:$0xff] }
  0x19   :  { %v172_v58 = vpack.c.bf16 %v158_v57, %v157_v56  ;;  %v156_v60 = vld [vmem:[#allocation2 + $0xa0] sm:$0xff]  ;;  %v246_v62 = vld [vmem:[#allocation2 + $0x90] ss:$0 sm:$0xff]  ;;  %v247_v7 = vld [vmem:[#allocation2 + $0x118] ss:$0 sm:$0xff] }
  0x1a   :  { %279 = vmatpush3.bf16.msra.mxu1 %v105_v14  ;;  %v171_v61 = vpack.c.bf16 %v156_v60, %v155_v59 }
  0x1b   :  { %280 = vmatprep.subr.bf16.mxu1 %v348_v0  ;;  %297 = vmatpush3.bf16.msra.mxu0 %v177_v35 }
  0x1c   :  { %298 = vmatprep.subr.bf16.mxu0 %v348_v0 }
  0x1e   :  { %281 = vmatpush3.bf16.msra.mxu1 %v104_v17 }
  0x1f   :  { %282 = vmatprep.subr.bf16.mxu1 %v348_v0  ;;  %299 = vmatpush3.bf16.msra.mxu0 %v176_v38 }
  0x20   :  { %300 = vmatprep.subr.bf16.mxu0 %v348_v0 }
  0x22   :  { %283 = vmatpush3.bf16.msra.mxu1 %v103_v20 }
  0x23   :  { %284 = vmatprep.subr.bf16.mxu1 %v348_v0  ;;  %301 = vmatpush3.bf16.msra.mxu0 %v175_v41 }
  0x24   :  { %302 = vmatprep.subr.bf16.mxu0 %v348_v0 }
  0x26   :  { %285 = vmatpush3.bf16.msra.mxu1 %v102_v23 }
  0x27   :  { %286 = vmatprep.subr.bf16.mxu1 %v348_v0  ;;  %303 = vmatpush3.bf16.msra.mxu0 %v174_v44 }
  0x28   :  { %304 = vmatprep.subr.bf16.mxu0 %v348_v0 }
  0x2a   :  { %287 = vmatpush3.bf16.msra.mxu1 %v101_v26 }
  0x2b   :  { %288 = vmatprep.subr.bf16.mxu1 %v348_v0  ;;  %305 = vmatpush3.bf16.msra.mxu0 %v173_v47 }
  0x2c   :  { %306 = vmatprep.subr.bf16.mxu0 %v348_v0 }
  0x2e   :  { %289 = vmatpush3.bf16.msra.mxu1 %v100_v29 }
  0x2f   :  { %307 = vmatpush3.bf16.msra.mxu0 %v172_v58 }
  0x30   :  { %308 = vmatprep.subr.bf16.mxu0 %v348_v0 }
  0x33   :  { %309 = vmatpush3.bf16.msra.mxu0 %v171_v61 }
  0xd4   :  { %v77_v49 = vpop.f32.mrf.mxu0 }
  0xd5   :  { %v78_v50 = vadd.f32 %v244_v48, %v77_v49 }
  0xd6   :  { %v272_v51 = vpop.f32.mrf.mxu0 }
  0xd7   :  { %v83_v52 = vmax.f32 %v78_v50, 0.0 }
  0xd8   :  { %v80_v53 = vpop.f32.mrf.mxu0 }
  0xd9   :  { %v109_v54 = vpack.c.bf16 %v83_v52, %v83_v52 }
  0xda   :  { %v273_v55 = vpop.f32.mrf.mxu0 }
  0xdb   :  { %291 = vmatmul.mubr.bf16.vlgmr.msra.gmra.mxu1 %v109_v54 }
 0x19b   :  { %v148_v63 = vpop.f32.mrf.mxu1 }
 0x19c   :  { %v149_v1 = vadd.f32 %v246_v62, %v148_v63 }
 0x19d   :  { %v292_v2 = vpop.f32.mrf.mxu1 }
 0x19e   :  { %v154_v3 = vmax.f32 %v149_v1, 0.0 }
 0x19f   :  { %v151_v4 = vpop.f32.mrf.mxu1 }
 0x1a0   :  { %v180_v5 = vpack.c.bf16 %v154_v3, %v154_v3 }
 0x1a1   :  { %v293_v6 = vpop.f32.mrf.mxu1 }
 0x1a2   :  { %311 = vmatmul.mubr.bf16.vlgmr.msra.gmra.mxu0 %v180_v5 }
 0x262   :  { %v219_v8 = vpop.f32.mrf.mxu0 }
 0x263   :  { %v220_v9 = vadd.f32 %v247_v7, %v219_v8 }
 0x264   :  { %v312_v10 = vpop.f32.mrf.mxu0 }
 0x265   :  { %225 = vmax.xlane.f32.xlu0 %v220_v9 }
 0x266   :  { %v222_v11 = vpop.f32.mrf.mxu0 }
 0x268   :  { %v313_v0 = vpop.f32.mrf.mxu0 }
 0x2ee   :  { %v226_v12 = vpop.xlane.xlu0 %225 }
 0x2ef   :  { %v227_v13 = vsub.f32 %v220_v9, %v226_v12 }
 0x2f1   :  { %v228_v14 = vmul.f32 1.442695, %v227_v13 }
 0x2f3   :  { %319 = vpow2.f32 %v228_v14 }
 0x300   :  { %v320_v15 = vpop.eup %319 }
 0x301   :  { %230 = vadd.xlane.f32.xlu0 %v320_v15 }
 0x38a   :  { %v231_v16 = vpop.xlane.xlu0 %230 }
 0x38b   :  { %321 = vrcp.f32 %v231_v16 }
 0x398   :  { %v322_v17 = vpop.eup %321 }
 0x399   :  { %v233_v18 = vmul.f32 %v322_v17, %v231_v16 }
 0x39b   :  { %v234_v19 = vsub.f32 2.0, %v233_v18 }
 0x39d   :  { %v235_v20 = vmul.f32 %v322_v17, %v234_v19 }
 0x39f   :  { %v236_v21 = vmul.f32 %v320_v15, %v235_v20 }
 0x3a1   :  { %238 = vst.msk [vmem:[%s399_s2] sm:$0xff] %vm237_vm3, %v236_v21 }
 0x3a2   :  { %243 = vsyncpa [#allocation3], 1 }

</bundles_post_ra>
